<compile_context>
chip_gen: v5e
topology: v5e:2x2
jax: 0.10.0
libtpu: 0.0.40
codegen_flags: <defaults>
</compile_context>

<pallas_src>
import functools

import numpy as np
import jax
import jax.numpy as jnp
from jax import lax
from jax.experimental import pallas as pl
from jax.experimental.pallas import tpu as pltpu


def _srt_block_kernel(x_ref, t1_ref, t2_ref, o_ref, *, nb, ho, fold_rows):
    """Fused SRTConvBlock forward for one block of `nb` batch elements.

    x_ref : (nb, 2, hs, (W+2)*c_in)  zero-padded input rows, even/odd row split,
                                     (col, channel) merged on the lane axis.
    t1_ref: (3, (W+2)*c_in, W*c_hid) conv1 block-Toeplitz weights, one per kh.
    t2_ref: (3, W*c_hid,  wo*c_out)  conv2 block-Toeplitz weights, one per kh.
    o_ref : (nb, ho//2, 2*wo*c_out) if fold_rows else (nb, ho, wo*c_out)
    """
    f32 = jnp.float32
    # Weights load once per grid step; their block index never changes, so the
    # pipeline keeps them resident in VMEM across grid steps.
    t1_0, t1_1, t1_2 = t1_ref[0], t1_ref[1], t1_ref[2]
    t2_0, t2_1, t2_2 = t2_ref[0], t2_ref[1], t2_ref[2]
    wc1 = t1_0.shape[1]                      # W * c_hid

    for k in range(nb):                      # static unroll over the batch block
        xe = x_ref[k, 0]                     # even padded rows xp[2i]   -> (hs, (W+2)*c_in)
        xo = x_ref[k, 1]                     # odd  padded rows xp[2i+1]

        # ---- conv1 (3x3, stride 1, pad 1) + ReLU, row-parity split --------
        # act[2r]   reads padded rows 2r, 2r+1, 2r+2  = xe[r],   xo[r],   xe[r+1]
        # act[2r+1] reads padded rows 2r+1,2r+2,2r+3  = xo[r],   xe[r+1], xo[r+1]
        # The kw / channel contraction lives inside the Toeplitz matrices.
        act_e = jnp.dot(xe[0:ho], t1_0, preferred_element_type=f32)
        act_e += jnp.dot(xo[0:ho], t1_1, preferred_element_type=f32)
        act_e += jnp.dot(xe[1:ho + 1], t1_2, preferred_element_type=f32)
        act_e = jnp.maximum(act_e, 0.0)                      # (ho, W*c_hid)

        act_o = jnp.dot(xo[0:ho], t1_0, preferred_element_type=f32)
        act_o += jnp.dot(xe[1:ho + 1], t1_1, preferred_element_type=f32)
        act_o += jnp.dot(xo[1:ho + 1], t1_2, preferred_element_type=f32)
        act_o = jnp.maximum(act_o, 0.0)                      # (ho, W*c_hid)

        # ---- conv2 (3x3, stride 2, pad 1) + ReLU ---------------------------
        # Output row r reads padded-act rows 2r, 2r+1, 2r+2:
        #   kh=0 -> act[2r-1] = act_o[r-1]  (zero for r=0)
        #   kh=1 -> act[2r]   = act_e[r]
        #   kh=2 -> act[2r+1] = act_o[r]
        # The kw border (col -1) is already folded into t2 (missing band).
        act_o_up = jnp.concatenate(
            [jnp.zeros((1, wc1), f32), act_o[:ho - 1]], axis=0)

        y = jnp.dot(act_o_up, t2_0, preferred_element_type=f32)
        y += jnp.dot(act_e, t2_1, preferred_element_type=f32)
        y += jnp.dot(act_o, t2_2, preferred_element_type=f32)
        y = jnp.maximum(y, 0.0)                              # (ho, wo*c_out)

        if fold_rows:
            # Lane-dense store: (ho, wo*c_out) -> (ho//2, 2*wo*c_out); undone by
            # a free XLA reshape/transpose in the wrapper.
            h2 = ho // 2
            y = jnp.concatenate([y[:h2], y[h2:]], axis=1)
        o_ref[k] = y.astype(o_ref.dtype)


def _toeplitz_weights(w1_oihw, w2_oihw, w):
    """Block-Toeplitz matrices turning both 3x3 convs into plain row matmuls.

    Rows carry (width * channels) on the lane axis; the zero structure of the
    matrices encodes the spatial padding.  Built with XLA outside the kernel;
    selector matrices are static numpy constants.
    """
    c_hid, c_in = w1_oihw.shape[0], w1_oihw.shape[1]
    c_out = w2_oihw.shape[0]
    wo = w // 2
    w1_t = jnp.transpose(w1_oihw, (2, 3, 1, 0))   # (kh, kw, c_in, c_hid)
    w2_t = jnp.transpose(w2_oihw, (2, 3, 1, 0))   # (kh, kw, c_hid, c_out)

    # conv1 (stride 1): T1[kh][(x+kw)*c_in + ci, x*c_hid + h] = w1[h, ci, kh, kw]
    t1 = []
    for kh in range(3):
        acc = jnp.zeros(((w + 2) * c_in, w * c_hid), w1_t.dtype)
        for kw in range(3):
            sel = np.eye(w + 2, w, k=-kw, dtype=np.float32)      # row j == x + kw
            acc = acc + jnp.kron(jnp.asarray(sel, w1_t.dtype), w1_t[kh, kw])
        t1.append(acc)
    t1 = jnp.stack(t1)                             # (3, (W+2)*c_in, W*c_hid)

    # conv2 (stride 2): T2[kh][x*c_hid + ch, c*c_out + o] = w2[o, ch, kh, kw]
    #                   at x = 2c + kw - 1 (missing band == zero padding).
    t2 = []
    for kh in range(3):
        acc = jnp.zeros((w * c_hid, wo * c_out), w2_t.dtype)
        for kw in range(3):
            sel = np.zeros((w, wo), np.float32)
            for c in range(wo):
                x = 2 * c + kw - 1
                if 0 <= x < w:
                    sel[x, c] = 1.0
            acc = acc + jnp.kron(jnp.asarray(sel, w2_t.dtype), w2_t[kh, kw])
        t2.append(acc)
    t2 = jnp.stack(t2)                             # (3, W*c_hid, wo*c_out)
    return t1, t2


def srt_conv_block(x_nchw, w1_oihw, w2_oihw, *, batch_block=None):
    """SRTConvBlock forward. Input/output in PyTorch NCHW; fused Pallas kernel."""
    n, c_in, h, w = x_nchw.shape
    c_hid = w1_oihw.shape[0]
    c_out = w2_oihw.shape[0]
    assert h % 2 == 0 and w % 2 == 0  # TODO(synk): odd spatial dims need extra edge handling
    ho, wo = h // 2, w // 2
    hs = ho + 1                        # number of even (= odd) padded rows
    row_len = (w + 2) * c_in           # lane-merged padded input row
    fold_rows = (ho % 2 == 0)          # lane-dense (ho//2, 2*wo*c_out) output layout

    # Batch blocking: keep at most two grid steps so v7x's two TensorCores can
    # split the batch; the extra step on single-TC v5e/v6e is ~0.35us.
    if batch_block is None:
        batch_block = n // 2 if (n % 2 == 0 and n > 2) else 1
    assert n % batch_block == 0

    # --- wrapper glue (plain XLA, fused under one jit, tiny tensors) ---
    x = jnp.transpose(x_nchw, (0, 2, 3, 1))                      # NCHW -> NHWC
    xp = jnp.pad(x, ((0, 0), (1, 1), (1, 1), (0, 0)))            # padding=1
    xm = xp.reshape(n, h + 2, row_len)                           # merge (col, ch) on lanes
    x_eo = jnp.stack([xm[:, 0::2, :], xm[:, 1::2, :]], axis=1)   # (n, 2, hs, row_len)

    t1, t2 = _toeplitz_weights(w1_oihw, w2_oihw, w)

    if fold_rows:
        out_rows, out_lanes = ho // 2, 2 * wo * c_out
    else:
        out_rows, out_lanes = ho, wo * c_out

    kernel = functools.partial(_srt_block_kernel, nb=batch_block, ho=ho,
                               fold_rows=fold_rows)

    y = pl.pallas_call(
        kernel,
        out_shape=jax.ShapeDtypeStruct((n, out_rows, out_lanes), x_nchw.dtype),
        grid=(n // batch_block,),
        in_specs=[
            pl.BlockSpec((batch_block, 2, hs, row_len), lambda g: (g, 0, 0, 0)),
            pl.BlockSpec((3, (w + 2) * c_in, w * c_hid), lambda g: (0, 0, 0)),
            pl.BlockSpec((3, w * c_hid, wo * c_out), lambda g: (0, 0, 0)),
        ],
        out_specs=pl.BlockSpec((batch_block, out_rows, out_lanes),
                               lambda g: (g, 0, 0)),
        compiler_params=pltpu.CompilerParams(
            dimension_semantics=("parallel",),
            vmem_limit_bytes=32 * 1024 * 1024),
    )(x_eo, t1, t2)

    # Undo the kernel's lane-dense layout (free XLA reshapes/transposes).
    if fold_rows:
        y = y.reshape(n, ho // 2, 2, wo * c_out)
        y = jnp.transpose(y, (0, 2, 1, 3)).reshape(n, ho, wo * c_out)
    y = y.reshape(n, ho, wo, c_out)
    return jnp.transpose(y, (0, 3, 1, 2))                        # NHWC -> NCHW


def _ref_forward(x_nchw, w1, w2):
    """Plain-JAX reference matching the PyTorch module, for validation."""
    dn = ("NCHW", "OIHW", "NCHW")
    y = lax.conv_general_dilated(x_nchw, w1, (1, 1), ((1, 1), (1, 1)),
                                 dimension_numbers=dn)
    y = jnp.maximum(y, 0.0)
    y = lax.conv_general_dilated(y, w2, (2, 2), ((1, 1), (1, 1)),
                                 dimension_numbers=dn)
    return jnp.maximum(y, 0.0)


if __name__ == "__main__":
    # Module config: in_channels=4 -> hidden_channels=4, out_channels=8 (defaults).
    N, C_IN, H, W = 2, 4, 16, 16
    C_HID = C_IN
    C_OUT = 2 * C_HID

    key = jax.random.PRNGKey(0)
    k_x, k_w1, k_w2 = jax.random.split(key, 3)

    x = jax.random.normal(k_x, (N, C_IN, H, W), jnp.float32)
    # Deterministic synthetic weights (PyTorch Conv2d weight shapes, OIHW), no bias.
    w1 = jax.random.normal(k_w1, (C_HID, C_IN, 3, 3), jnp.float32) * (1.0 / (C_IN * 9) ** 0.5)
    w2 = jax.random.normal(k_w2, (C_OUT, C_HID, 3, 3), jnp.float32) * (1.0 / (C_HID * 9) ** 0.5)

    fwd = jax.jit(srt_conv_block)
    y = jax.block_until_ready(fwd(x, w1, w2))

    assert y.shape == (N, C_OUT, H // 2, W // 2), y.shape
    y_ref = _ref_forward(x, w1, w2)
    if not jnp.allclose(y, y_ref, atol=1e-4, rtol=1e-4):
        raise SystemExit("Pallas result does not match JAX reference")

    print("KERNEL_OK")
</pallas_src>

<mosaic_0001>
module attributes {stable_mosaic.version = 11 : i64} {
  func.func @_srt_block_kernel(%arg0: i32, %arg1: memref<1x2x9x72xf32, #tpu.memory_space<vmem>>, %arg2: memref<3x72x64xf32, #tpu.memory_space<vmem>>, %arg3: memref<3x64x64xf32, #tpu.memory_space<vmem>>, %arg4: memref<1x4x128xf32, #tpu.memory_space<vmem>>) attributes {dimension_semantics = [#tpu.dimension_semantics<parallel>], iteration_bounds = array<i64: 2>, scalar_prefetch = 0 : i64, scratch_operands = 0 : i64, tpu.core_type = #tpu.core_type<tc>, window_params = [{transform_indices = @transform_0, window_bounds = array<i64: 1, 2, 9, 72>}, {pipeline_mode = #tpu.pipeline_mode<synchronous>, transform_indices = @transform_1, window_bounds = array<i64: 3, 72, 64>}, {pipeline_mode = #tpu.pipeline_mode<synchronous>, transform_indices = @transform_2, window_bounds = array<i64: 3, 64, 64>}, {transform_indices = @transform_3, window_bounds = array<i64: 1, 4, 128>}]} {
    %c0 = arith.constant 0 : index
    %c0_0 = arith.constant 0 : index
    %c0_1 = arith.constant 0 : index
    %0 = vector.load %arg2[%c0, %c0_0, %c0_1] : memref<3x72x64xf32, #tpu.memory_space<vmem>>, vector<1x72x64xf32>
    %1 = vector.shape_cast %0 : vector<1x72x64xf32> to vector<72x64xf32>
    %c1 = arith.constant 1 : index
    %c0_2 = arith.constant 0 : index
    %c0_3 = arith.constant 0 : index
    %2 = vector.load %arg2[%c1, %c0_2, %c0_3] : memref<3x72x64xf32, #tpu.memory_space<vmem>>, vector<1x72x64xf32>
    %3 = vector.shape_cast %2 : vector<1x72x64xf32> to vector<72x64xf32>
    %c2 = arith.constant 2 : index
    %c0_4 = arith.constant 0 : index
    %c0_5 = arith.constant 0 : index
    %4 = vector.load %arg2[%c2, %c0_4, %c0_5] : memref<3x72x64xf32, #tpu.memory_space<vmem>>, vector<1x72x64xf32>
    %5 = vector.shape_cast %4 : vector<1x72x64xf32> to vector<72x64xf32>
    %c0_6 = arith.constant 0 : index
    %c0_7 = arith.constant 0 : index
    %c0_8 = arith.constant 0 : index
    %6 = vector.load %arg3[%c0_6, %c0_7, %c0_8] : memref<3x64x64xf32, #tpu.memory_space<vmem>>, vector<1x64x64xf32>
    %7 = vector.shape_cast %6 : vector<1x64x64xf32> to vector<64x64xf32>
    %c1_9 = arith.constant 1 : index
    %c0_10 = arith.constant 0 : index
    %c0_11 = arith.constant 0 : index
    %8 = vector.load %arg3[%c1_9, %c0_10, %c0_11] : memref<3x64x64xf32, #tpu.memory_space<vmem>>, vector<1x64x64xf32>
    %9 = vector.shape_cast %8 : vector<1x64x64xf32> to vector<64x64xf32>
    %c2_12 = arith.constant 2 : index
    %c0_13 = arith.constant 0 : index
    %c0_14 = arith.constant 0 : index
    %10 = vector.load %arg3[%c2_12, %c0_13, %c0_14] : memref<3x64x64xf32, #tpu.memory_space<vmem>>, vector<1x64x64xf32>
    %11 = vector.shape_cast %10 : vector<1x64x64xf32> to vector<64x64xf32>
    %c0_15 = arith.constant 0 : index
    %c0_16 = arith.constant 0 : index
    %c0_17 = arith.constant 0 : index
    %c0_18 = arith.constant 0 : index
    %12 = vector.load %arg1[%c0_15, %c0_16, %c0_17, %c0_18] : memref<1x2x9x72xf32, #tpu.memory_space<vmem>>, vector<1x1x9x72xf32>
    %13 = vector.shape_cast %12 : vector<1x1x9x72xf32> to vector<9x72xf32>
    %c0_19 = arith.constant 0 : index
    %c1_20 = arith.constant 1 : index
    %c0_21 = arith.constant 0 : index
    %c0_22 = arith.constant 0 : index
    %14 = vector.load %arg1[%c0_19, %c1_20, %c0_21, %c0_22] : memref<1x2x9x72xf32, #tpu.memory_space<vmem>>, vector<1x1x9x72xf32>
    %15 = vector.shape_cast %14 : vector<1x1x9x72xf32> to vector<9x72xf32>
    %16 = vector.extract_strided_slice %13 {offsets = [0, 0], sizes = [8, 72], strides = [1, 1]} : vector<9x72xf32> to vector<8x72xf32>
    %cst = arith.constant dense<0.000000e+00> : vector<8x64xf32>
    %17 = tpu.matmul %16, %1, %cst {dimension_numbers = #tpu.dot_dimension_numbers<[1], [0], [0], [1], [0, 0, 1, 1], [], []>} : vector<8x72xf32>, vector<72x64xf32>, vector<8x64xf32> -> vector<8x64xf32>
    %18 = vector.extract_strided_slice %15 {offsets = [0, 0], sizes = [8, 72], strides = [1, 1]} : vector<9x72xf32> to vector<8x72xf32>
    %cst_23 = arith.constant dense<0.000000e+00> : vector<8x64xf32>
    %19 = tpu.matmul %18, %3, %cst_23 {dimension_numbers = #tpu.dot_dimension_numbers<[1], [0], [0], [1], [0, 0, 1, 1], [], []>} : vector<8x72xf32>, vector<72x64xf32>, vector<8x64xf32> -> vector<8x64xf32>
    %20 = arith.addf %17, %19 : vector<8x64xf32>
    %21 = vector.extract_strided_slice %13 {offsets = [1, 0], sizes = [8, 72], strides = [1, 1]} : vector<9x72xf32> to vector<8x72xf32>
    %cst_24 = arith.constant dense<0.000000e+00> : vector<8x64xf32>
    %22 = tpu.matmul %21, %5, %cst_24 {dimension_numbers = #tpu.dot_dimension_numbers<[1], [0], [0], [1], [0, 0, 1, 1], [], []>} : vector<8x72xf32>, vector<72x64xf32>, vector<8x64xf32> -> vector<8x64xf32>
    %23 = arith.addf %20, %22 : vector<8x64xf32>
    %cst_25 = arith.constant 0.000000e+00 : f32
    %24 = vector.broadcast %cst_25 : f32 to vector<8x64xf32>
    %25 = arith.maximumf %23, %24 : vector<8x64xf32>
    %26 = vector.extract_strided_slice %15 {offsets = [0, 0], sizes = [8, 72], strides = [1, 1]} : vector<9x72xf32> to vector<8x72xf32>
    %cst_26 = arith.constant dense<0.000000e+00> : vector<8x64xf32>
    %27 = tpu.matmul %26, %1, %cst_26 {dimension_numbers = #tpu.dot_dimension_numbers<[1], [0], [0], [1], [0, 0, 1, 1], [], []>} : vector<8x72xf32>, vector<72x64xf32>, vector<8x64xf32> -> vector<8x64xf32>
    %28 = vector.extract_strided_slice %13 {offsets = [1, 0], sizes = [8, 72], strides = [1, 1]} : vector<9x72xf32> to vector<8x72xf32>
    %cst_27 = arith.constant dense<0.000000e+00> : vector<8x64xf32>
    %29 = tpu.matmul %28, %3, %cst_27 {dimension_numbers = #tpu.dot_dimension_numbers<[1], [0], [0], [1], [0, 0, 1, 1], [], []>} : vector<8x72xf32>, vector<72x64xf32>, vector<8x64xf32> -> vector<8x64xf32>
    %30 = arith.addf %27, %29 : vector<8x64xf32>
    %31 = vector.extract_strided_slice %15 {offsets = [1, 0], sizes = [8, 72], strides = [1, 1]} : vector<9x72xf32> to vector<8x72xf32>
    %cst_28 = arith.constant dense<0.000000e+00> : vector<8x64xf32>
    %32 = tpu.matmul %31, %5, %cst_28 {dimension_numbers = #tpu.dot_dimension_numbers<[1], [0], [0], [1], [0, 0, 1, 1], [], []>} : vector<8x72xf32>, vector<72x64xf32>, vector<8x64xf32> -> vector<8x64xf32>
    %33 = arith.addf %30, %32 : vector<8x64xf32>
    %cst_29 = arith.constant 0.000000e+00 : f32
    %34 = vector.broadcast %cst_29 : f32 to vector<8x64xf32>
    %35 = arith.maximumf %33, %34 : vector<8x64xf32>
    %cst_30 = arith.constant 0.000000e+00 : f32
    %36 = vector.broadcast %cst_30 : f32 to vector<1x64xf32>
    %37 = vector.extract_strided_slice %35 {offsets = [0, 0], sizes = [7, 64], strides = [1, 1]} : vector<8x64xf32> to vector<7x64xf32>
    %38 = tpu.concatenate %36, %37 in 0 : vector<1x64xf32>, vector<7x64xf32> -> vector<8x64xf32>
    %cst_31 = arith.constant dense<0.000000e+00> : vector<8x64xf32>
    %39 = tpu.matmul %38, %7, %cst_31 {dimension_numbers = #tpu.dot_dimension_numbers<[1], [0], [0], [1], [0, 0, 1, 1], [], []>} : vector<8x64xf32>, vector<64x64xf32>, vector<8x64xf32> -> vector<8x64xf32>
    %cst_32 = arith.constant dense<0.000000e+00> : vector<8x64xf32>
    %40 = tpu.matmul %25, %9, %cst_32 {dimension_numbers = #tpu.dot_dimension_numbers<[1], [0], [0], [1], [0, 0, 1, 1], [], []>} : vector<8x64xf32>, vector<64x64xf32>, vector<8x64xf32> -> vector<8x64xf32>
    %41 = arith.addf %39, %40 : vector<8x64xf32>
    %cst_33 = arith.constant dense<0.000000e+00> : vector<8x64xf32>
    %42 = tpu.matmul %35, %11, %cst_33 {dimension_numbers = #tpu.dot_dimension_numbers<[1], [0], [0], [1], [0, 0, 1, 1], [], []>} : vector<8x64xf32>, vector<64x64xf32>, vector<8x64xf32> -> vector<8x64xf32>
    %43 = arith.addf %41, %42 : vector<8x64xf32>
    %cst_34 = arith.constant 0.000000e+00 : f32
    %44 = vector.broadcast %cst_34 : f32 to vector<8x64xf32>
    %45 = arith.maximumf %43, %44 : vector<8x64xf32>
    %46 = vector.extract_strided_slice %45 {offsets = [0, 0], sizes = [4, 64], strides = [1, 1]} : vector<8x64xf32> to vector<4x64xf32>
    %47 = vector.extract_strided_slice %45 {offsets = [4, 0], sizes = [4, 64], strides = [1, 1]} : vector<8x64xf32> to vector<4x64xf32>
    %48 = tpu.concatenate %46, %47 in 1 : vector<4x64xf32>, vector<4x64xf32> -> vector<4x128xf32>
    %c0_35 = arith.constant 0 : index
    %c0_36 = arith.constant 0 : index
    %c0_37 = arith.constant 0 : index
    %49 = vector.load %arg4[%c0_35, %c0_36, %c0_37] : memref<1x4x128xf32, #tpu.memory_space<vmem>>, vector<1x4x128xf32>
    %50 = vector.shape_cast %49 : vector<1x4x128xf32> to vector<4x128xf32>
    %51 = vector.shape_cast %48 : vector<4x128xf32> to vector<1x4x128xf32>
    tpu.vector_store %arg4[%c0_35, %c0_36, %c0_37], %51 {strides = array<i32>} : memref<1x4x128xf32, #tpu.memory_space<vmem>>, vector<1x4x128xf32>,
    return
  }
  func.func @transform_0(%arg0: i32) -> (i32, i32, i32, i32) {
    %c0_i32 = arith.constant 0 : i32
    %c0_i32_0 = arith.constant 0 : i32
    %c0_i32_1 = arith.constant 0 : i32
    %c0_i32_2 = arith.constant 0 : i32
    return %arg0, %c0_i32, %c0_i32_0, %c0_i32_1 : i32, i32, i32, i32
  }
  func.func @transform_1(%arg0: i32) -> (i32, i32, i32) {
    %c0_i32 = arith.constant 0 : i32
    %c0_i32_0 = arith.constant 0 : i32
    %c0_i32_1 = arith.constant 0 : i32
    %c0_i32_2 = arith.constant 0 : i32
    return %c0_i32, %c0_i32_0, %c0_i32_1 : i32, i32, i32
  }
  func.func @transform_2(%arg0: i32) -> (i32, i32, i32) {
    %c0_i32 = arith.constant 0 : i32
    %c0_i32_0 = arith.constant 0 : i32
    %c0_i32_1 = arith.constant 0 : i32
    %c0_i32_2 = arith.constant 0 : i32
    return %c0_i32, %c0_i32_0, %c0_i32_1 : i32, i32, i32
  }
  func.func @transform_3(%arg0: i32) -> (i32, i32, i32) {
    %c0_i32 = arith.constant 0 : i32
    %c0_i32_0 = arith.constant 0 : i32
    %c0_i32_1 = arith.constant 0 : i32
    return %arg0, %c0_i32, %c0_i32_0 : i32, i32, i32
  }
}

</mosaic_0001>

<bundles_post_ra>
// kernel: srt_conv_block.1
= control target key start
LH: loop header
LB: loop body
LE: loop exit
PB: predicated region body
PF: predicated region fallthrough
CT: control target
= control target key end

     0   :  { %s603_s12 = smov 0   ;;  %s835_s0 = inlined_call_operand.vmem [shape: f32[2,2,9,72], index: 0, kind: input, shape index: {}]   ;;  %s836_s1 = inlined_call_operand.vmem [shape: f32[3,72,64], index: 1, kind: input, shape index: {}]   ;;  %s837_s2 = inlined_call_operand.vmem [shape: f32[3,64,64], index: 2, kind: input, shape index: {}]   ;;  %s838_s3 = inlined_call_operand.vmem [shape: f32[2,4,128], index: 3, kind: output, shape index: {}]  }
   0x1 LB: > { %s509_s13 = sadd.s32 4294967295, %s580_s12   ;;  %p513_p0 = scmp.ge.s32.totalorder %s580_s12, 1  ;;  %s580_s12 = sphi %s603_s12, %s13_s12  }
   0x2   : > { %p137_p1 = scmp.lt.s32.totalorder %s580_s12, 3 }
   0x4   : > { %p138_p2 = pnand %p513_p0, %p137_p1 }
   0x5   : > { %p160_p3 = scmp.lt.s32.totalorder (!%p138_p2), %s509_s13, 1  ;;  %s582_s20 = smov (!%p138_p2), 64  }
   0x6   : > { %141 = sbr.rel (%p138_p2) target bundleno = 439 (0x1b7), region = 32 }
   0xb   : > { %v525_v0 = vld [vmem:[%s836_s1 + $0x88] sm:$0xff]  ;;  %v524_v1 = vld [vmem:[%s836_s1 + $0x80] sm:$0xff]  ;;  %v626_v3 = vld [vmem:[%s836_s1 + $0x38] sm:$0xff]  ;;  %s840_s13 = smov (!%p160_p3, %s509_s13), 1  ;;  %vm277_vm0 = vcmask 1046528   ;;  %vm229_vm1 = vcmask 588800  }
   0xc   : > { %v620_v2 = vld [vmem:[%s836_s1 + $0x40] sm:$0xff]  ;;  %240 = vmatpush.msra.mxu0 %v525_v0  ;;  %v631_v4 = vld [vmem:[%s836_s1 + $0xd0] sm:$0xff]  ;;  %v523_v5 = vld [vmem:[%s836_s1 + $0x78] sm:$0xff]  ;;  %312 = vmatpush.msra.mxu3 %v525_v0  ;;  %s564_s11 = sshll.u32 %s840_s13, 5  ;;  %vm378_vm2 = vcmask 523264   ;;  %vm376_vm3 = vcmask 1040384  }
   0xd   : > { %263 = vmatpush.msra.mxu1 %v620_v2  ;;  %290 = vmatpush.msra.mxu2 %v631_v4  ;;  %v640_v6 = vld [vmem:[%s836_s1 + $0x30] sm:$0xff]  ;;  %v645_v7 = vld [vmem:[%s836_s1 + $0xc8] sm:$0xff]  ;;  %v653_v8 = vld [vmem:[%s836_s1 + $0xc0] sm:$0xff]  ;;  %s696_s26 = scalar_lea.vmem %s835_s0, %s564_s11  ;;  %s516_s21 = sshll.u32 %s840_s13, 2 }
   0xe   : > { %241 = vmatpush.msra.mxu0 %v524_v1  ;;  %v522_v9 = vld [vmem:[%s836_s1 + $0x70] sm:$0xff]  ;;  %v662_v10 = vld [vmem:[%s836_s1 + $0x28] sm:$0xff]  ;;  %313 = vmatpush.msra.mxu3 %v524_v1  ;;  %v668_v11 = vld [vmem:[%s836_s1 + $0xb8] sm:$0xff]  ;;  %s168_s24 = scalar_lea.vmem %s838_s3, %s516_s21 }
   0xf   : > { %264 = vmatpush.msra.mxu1 %v626_v3  ;;  %291 = vmatpush.msra.mxu2 %v645_v7  ;;  %v521_v12 = vld [vmem:[%s836_s1 + $0x68] sm:$0xff]  ;;  %v678_v13 = vld [vmem:[%s836_s1 + $0x20] sm:$0xff]  ;;  %v530_v14 = vld [vmem:[%s836_s1 + $0xb0] sm:$0xff] }
  0x10   : > { %242 = vmatpush.msra.mxu0 %v523_v5  ;;  %314 = vmatpush.msra.mxu3 %v523_v5  ;;  %v520_v15 = vld [vmem:[%s836_s1 + $0x60] sm:$0xff]  ;;  %v691_v16 = vld [vmem:[%s836_s1 + $0x18] sm:$0xff]  ;;  %v529_v17 = vld [vmem:[%s836_s1 + $0xa8] sm:$0xff] }
  0x11   : > { %265 = vmatpush.msra.mxu1 %v640_v6  ;;  %292 = vmatpush.msra.mxu2 %v653_v8  ;;  %v519_v18 = vld [vmem:[%s836_s1 + $0x58] sm:$0xff]  ;;  %v171_v19 = vld [vmem:[%s836_s1 + $0x10] sm:$0xff]  ;;  %v528_v20 = vld [vmem:[%s836_s1 + $0xa0] sm:$0xff] }
  0x12   : > { %243 = vmatpush.msra.mxu0 %v522_v9  ;;  %315 = vmatpush.msra.mxu3 %v522_v9  ;;  %v224_v21 = vld [vmem:[%s696_s26] sm:$0xff]  ;;  %v225_v22 = vld [vmem:[%s696_s26 + $0x8] sm:$0x1]  ;;  %v518_v23 = vld [vmem:[%s836_s1 + $0x50] sm:$0xff] }
  0x13   : > { %266 = vmatpush.msra.mxu1 %v662_v10  ;;  %293 = vmatpush.msra.mxu2 %v668_v11  ;;  %v170_v24 = vld [vmem:[%s836_s1 + $0x8] sm:$0xff]  ;;  %v527_v25 = vld [vmem:[%s836_s1 + $0x98] sm:$0xff]  ;;  %v169_v27 = vld [vmem:[%s836_s1] sm:$0xff]  ;;  %v278_v28 = vrot.slane %v224_v21, 1  ;;  %v279_v29 = vrot.slane %v225_v22, 1 }
  0x14   : > { %244 = vmatpush.msra.mxu0 %v521_v12  ;;  %316 = vmatpush.msra.mxu3 %v521_v12  ;;  %v517_v26 = vld [vmem:[%s836_s1 + $0x48] sm:$0xff]  ;;  %v526_v30 = vld [vmem:[%s836_s1 + $0x90] sm:$0xff]  ;;  %v542_v33 = vld [vmem:[%s837_s2 + $0x78] sm:$0xff] }
  0x15   : > { %267 = vmatpush.msra.mxu1 %v678_v13  ;;  %294 = vmatpush.msra.mxu2 %v530_v14  ;;  %v551_v31 = vld [vmem:[%s696_s26 + $0x10] sm:$0xff]  ;;  %v280_v32 = vsel %vm277_vm0, %v278_v28, %v279_v29  ;;  %v540_v35 = vld [vmem:[%s837_s2 + $0x68] sm:$0xff]  ;;  %v552_v36 = vld [vmem:[%s696_s26 + $0x18] sm:$0x1] }
  0x16   : > { %245 = vmatpush.msra.mxu0 %v520_v15  ;;  %317 = vmatpush.msra.mxu3 %v520_v15  ;;  %v541_v34 = vld [vmem:[%s837_s2 + $0x70] sm:$0xff]  ;;  %v539_v37 = vld [vmem:[%s837_s2 + $0x60] sm:$0xff]  ;;  %v346_v38 = vrot.slane %v551_v31, 1  ;;  %v347_v39 = vrot.slane %v552_v36, 1  ;;  %v538_v40 = vld [vmem:[%s837_s2 + $0x58] sm:$0xff] }
  0x17   : > { %268 = vmatpush.msra.mxu1 %v691_v16  ;;  %295 = vmatpush.msra.mxu2 %v529_v17  ;;  %v537_v41 = vld [vmem:[%s837_s2 + $0x50] sm:$0xff]  ;;  %v536_v43 = vld [vmem:[%s837_s2 + $0x48] sm:$0xff]  ;;  %v535_v44 = vld [vmem:[%s837_s2 + $0x40] sm:$0xff] }
  0x18   : > { %246 = vmatpush.msra.mxu0 %v519_v18  ;;  %318 = vmatpush.msra.mxu3 %v519_v18  ;;  %v348_v42 = vsel %vm277_vm0, %v346_v38, %v347_v39  ;;  %v550_v45 = vld [vmem:[%s837_s2 + $0xb8] sm:$0xff]  ;;  %v549_v46 = vld [vmem:[%s837_s2 + $0xb0] sm:$0xff]  ;;  %v548_v48 = vld [vmem:[%s837_s2 + $0xa8] sm:$0xff] }
  0x19   : > { %269 = vmatpush.msra.mxu1 %v171_v19  ;;  %296 = vmatpush.msra.mxu2 %v528_v20  ;;  %v205_v47 = vld [vmem:[%s837_s2 + $0x38] sm:$0xff]  ;;  %v204_v49 = vld [vmem:[%s837_s2 + $0x30] sm:$0xff]  ;;  %v547_v50 = vld [vmem:[%s837_s2 + $0xa0] sm:$0xff] }
  0x1a   : > { %247 = vmatpush.msra.mxu0 %v518_v23  ;;  %319 = vmatpush.msra.mxu3 %v518_v23  ;;  %v203_v51 = vld [vmem:[%s837_s2 + $0x28] sm:$0xff]  ;;  %v546_v52 = vld [vmem:[%s837_s2 + $0x98] sm:$0xff]  ;;  %v202_v53 = vld [vmem:[%s837_s2 + $0x20] sm:$0xff] }
  0x1b   : > { %270 = vmatpush.msra.mxu1 %v170_v24  ;;  %297 = vmatpush.msra.mxu2 %v527_v25  ;;  %v545_v54 = vld [vmem:[%s837_s2 + $0x90] sm:$0xff]  ;;  %v201_v55 = vld [vmem:[%s837_s2 + $0x18] sm:$0xff]  ;;  %v544_v56 = vld [vmem:[%s837_s2 + $0x88] sm:$0xff] }
  0x1c   : > { %248 = vmatpush.msra.mxu0 %v517_v26  ;;  %320 = vmatpush.msra.mxu3 %v517_v26  ;;  %v200_v57 = vld [vmem:[%s837_s2 + $0x10] sm:$0xff]  ;;  %v543_v58 = vld [vmem:[%s837_s2 + $0x80] sm:$0xff]  ;;  %v199_v59 = vld [vmem:[%s837_s2 + $0x8] sm:$0xff] }
  0x1d   : > { %271 = vmatpush.msra.mxu1 %v169_v27  ;;  %298 = vmatpush.msra.mxu2 %v526_v30  ;;  %v198_v60 = vld [vmem:[%s837_s2] sm:$0xff] }
  0x1e   : > { %332 = vmatpush.msrb.mxu0 %v620_v2  ;;  %555 = vmatmul.msk.f32.vlgmr.msra.gmra.mxu2 %vm229_vm1, %v280_v32 }
  0x1f   : > { %358 = vmatpush.msrb.mxu1 %v631_v4  ;;  %553 = vmatmul.msk.f32.vlgmr.msra.gmra.mxu0 %vm229_vm1, %v551_v31 }
  0x20   : > { %333 = vmatpush.msrb.mxu0 %v626_v3  ;;  %554 = vmatmul.msk.f32.vlgmr.msra.gmra.mxu1 %vm229_vm1, %v224_v21 }
  0x21   : > { %359 = vmatpush.msrb.mxu1 %v645_v7  ;;  %390 = vmatpush.msrb.mxu2 %v542_v33 }
  0x22   : > { %334 = vmatpush.msrb.mxu0 %v640_v6  ;;  %556 = vmatmul.msk.f32.vlgmr.msra.gmra.mxu3 %vm229_vm1, %v280_v32 }
  0x23   : > { %360 = vmatpush.msrb.mxu1 %v653_v8  ;;  %391 = vmatpush.msrb.mxu2 %v541_v34 }
  0x24   : > { %335 = vmatpush.msrb.mxu0 %v662_v10  ;;  %413 = vmatpush.msrb.mxu3 %v205_v47 }
  0x25   : > { %361 = vmatpush.msrb.mxu1 %v668_v11  ;;  %392 = vmatpush.msrb.mxu2 %v540_v35 }
  0x26   : > { %336 = vmatpush.msrb.mxu0 %v678_v13  ;;  %414 = vmatpush.msrb.mxu3 %v204_v49 }
  0x27   : > { %362 = vmatpush.msrb.mxu1 %v530_v14  ;;  %393 = vmatpush.msrb.mxu2 %v539_v37 }
  0x28   : > { %337 = vmatpush.msrb.mxu0 %v691_v16  ;;  %415 = vmatpush.msrb.mxu3 %v203_v51 }
  0x29   : > { %363 = vmatpush.msrb.mxu1 %v529_v17  ;;  %394 = vmatpush.msrb.mxu2 %v538_v40 }
  0x2a   : > { %338 = vmatpush.msrb.mxu0 %v171_v19  ;;  %416 = vmatpush.msrb.mxu3 %v202_v53 }
  0x2b   : > { %364 = vmatpush.msrb.mxu1 %v528_v20  ;;  %395 = vmatpush.msrb.mxu2 %v537_v41 }
  0x2c   : > { %339 = vmatpush.msrb.mxu0 %v170_v24  ;;  %417 = vmatpush.msrb.mxu3 %v201_v55 }
  0x2d   : > { %365 = vmatpush.msrb.mxu1 %v527_v25  ;;  %396 = vmatpush.msrb.mxu2 %v536_v43 }
  0x2e   : > { %340 = vmatpush.msrb.mxu0 %v169_v27  ;;  %418 = vmatpush.msrb.mxu3 %v200_v57 }
  0x2f   : > { %366 = vmatpush.msrb.mxu1 %v526_v30  ;;  %557 = vmatmul.msk.f32.vlgmr.msrb.gmra.mxu0 %vm229_vm1, %v551_v31 }
  0x30   : > { %558 = vmatmul.msk.f32.vlgmr.msrb.gmra.mxu1 %vm229_vm1, %v348_v42  ;;  %397 = vmatpush.msrb.mxu2 %v535_v44 }
  0x31   : > { %419 = vmatpush.msrb.mxu3 %v199_v59 }
  0x32   : > { %435 = vmatpush.msra.mxu2 %v550_v45 }
  0x33   : > { %420 = vmatpush.msrb.mxu3 %v198_v60 }
  0x34   : > { %436 = vmatpush.msra.mxu2 %v549_v46 }
  0x36   : > { %437 = vmatpush.msra.mxu2 %v548_v48 }
  0x38   : > { %438 = vmatpush.msra.mxu2 %v547_v50 }
  0x3a   : > { %439 = vmatpush.msra.mxu2 %v546_v52 }
  0x3c   : > { %440 = vmatpush.msra.mxu2 %v545_v54 }
  0x3e   : > { %441 = vmatpush.msra.mxu2 %v544_v56 }
  0x40   : > { %442 = vmatpush.msra.mxu2 %v543_v58 }
  0x9c   : > { %v250_v61 = vpop.f32.mrf.mxu0 }
  0x9d   : > { %v273_v62 = vpop.f32.mrf.mxu1 }
  0x9e   : > { %v274_v63 = vadd.f32 %v273_v62, %v250_v61 }
  0xa1   : > { %v300_v0 = vpop.f32.mrf.mxu2 }
  0xa2   : > { %v303_v1 = vadd.f32 %v300_v0, %v274_v63 }
  0xa4   : > { %v304_v2 = vmax.f32 %v303_v1, 0.0 }
  0xa5   : > { %v322_v3 = vpop.f32.mrf.mxu3 }
  0xa6   : > { %559 = vmatmul.msk.f32.vlgmr.msrb.gmra.mxu2 %vm378_vm2, %v304_v2 }
  0xac   : > { %v342_v4 = vpop.f32.mrf.mxu0 }
  0xad   : > { %v368_v5 = vpop.f32.mrf.mxu1  ;;  %v343_v6 = vadd.f32 %v342_v4, %v322_v3 }
  0xaf   : > { %v371_v7 = vadd.f32 %v368_v5, %v343_v6 }
  0xb1   : > { %v372_v8 = vmax.f32 %v371_v7, 0.0 }
  0xb3   : > { %v374_v9 = vrot.slane %v372_v8, 7  ;;  %561 = vmatmul.msk.f32.vlgmr.msra.gmra.mxu2 %vm378_vm2, %v372_v8 }
  0xb5   : > { %v377_v10 = vsel %vm376_vm3, 0.0, %v374_v9 }
  0xb6   : > { %560 = vmatmul.msk.f32.vlgmr.msrb.gmra.mxu3 %vm378_vm2, %v377_v10 }
 0x129   : > { %v399_v11 = vpop.f32.mrf.mxu2 }
 0x136   : > { %v444_v14 = vpop.f32.mrf.mxu2 }
 0x139   : > { %v422_v12 = vpop.f32.mrf.mxu3 }
 0x13a   : > { %v423_v13 = vadd.f32 %v422_v12, %v399_v11 }
 0x13c   : > { %v447_v15 = vadd.f32 %v444_v14, %v423_v13 }
 0x13e   : > { %v448_v16 = vmax.f32 %v447_v15, 0.0 }
 0x140   : > { %v450_v17 = vrot.slane %v448_v16, 4 }
 0x142   : > { %451 = vrot.lane.b32.xlu0 %v450_v17, %s582_s20 }
 0x1b4   : > { %v452_v18 = vpop.permute.xlu0 %451 }
 0x1b5   : > { %v454_v19 = vsel %vm378_vm2, %v448_v16, %v452_v18 }
 0x1b6   : > { %455 = vst [vmem:[%s168_s24] sm:$0xf] %v454_v19 }
 0x1b7 PF: > { %s13_s12 = sadd.s32 1, %s580_s12  }
 0x1b8   : > { %p10_p4 = scmp.ge.s32.totalorder %s13_s12, 4  }
 0x1ba   :  { %12 = sbr.rel (!%p10_p4) target bundleno = 1 (0x1), region = 67 }

</bundles_post_ra>
